<compile_context>
chip_gen: v6e
topology: v6e:2x2x1
jax: 0.10.0
libtpu: 0.0.40
codegen_flags: <defaults>
</compile_context>

<pallas_src>
import math
from functools import partial

import jax
import jax.numpy as jnp
from jax import lax
from jax.experimental import pallas as pl
from jax.experimental.pallas import tpu as pltpu


# --------------------------------------------------------------------------- #
# Kernel                                                                      #
# --------------------------------------------------------------------------- #
def _pointer_kernel(x_ref, wqk_hbm, bqk_hbm, *rest, H, tq, apply_mask, packed):
    # x_ref:    (Bblk, S, H)  bf16  inputs for this batch block
    # wqk_hbm:  HBM ref       bf16  packed (H, 2H) or stacked (2, H, H) weights
    # bqk_hbm:  HBM ref       f32   packed (1, 2H) or stacked (2, 1, H) biases
    # mask_ref: (Bblk, 1, S)  bf16  keep flags (present only when apply_mask)
    # o_ref:    (Bblk, tq, S)       scores for the current query tile
    # w_scr/b_scr: resident single-buffered VMEM copies of weights / biases
    # q_scr/k_scr: (Bblk, S, H) bf16 projected Q / K for the whole batch block
    if apply_mask:
        mask_ref, o_ref, w_scr, b_scr, q_scr, k_scr, sem = rest
    else:
        mask_ref = None
        o_ref, w_scr, b_scr, q_scr, k_scr, sem = rest

    qi = pl.program_id(1)
    bblk, seq, _ = x_ref.shape

    # Project Q and K for the whole batch block once per block (qi == 0):
    # bf16 MXU operands, f32 accumulation, bias in f32, results stored bf16.
    @pl.when(qi == 0)
    def _():
        w_cp = pltpu.make_async_copy(wqk_hbm, w_scr, sem.at[0])
        b_cp = pltpu.make_async_copy(bqk_hbm, b_scr, sem.at[1])
        w_cp.start()
        b_cp.start()
        w_cp.wait()
        b_cp.wait()

        x = x_ref[...].reshape(bblk * seq, H)            # already bf16
        if packed:
            y = jnp.dot(x, w_scr[...], preferred_element_type=jnp.float32)
            y = y + b_scr[...]                           # bias in f32
            q = y[:, :H]      # lane-aligned: packed path only when H % 128 == 0
            k = y[:, H:]
        else:
            q = jnp.dot(x, w_scr[0], preferred_element_type=jnp.float32) + b_scr[0]
            k = jnp.dot(x, w_scr[1], preferred_element_type=jnp.float32) + b_scr[1]
        q_scr[...] = q.reshape(bblk, seq, H).astype(jnp.bfloat16)
        k_scr[...] = k.reshape(bblk, seq, H).astype(jnp.bfloat16)

    q_start = pl.multiple_of(qi * tq, tq)
    q_tile = q_scr[:, pl.ds(q_start, tq), :]             # (Bblk, tq, H) bf16
    k_all = k_scr[...]                                   # (Bblk, S,  H) bf16

    # Batched QK^T: contract the hidden axis directly (no materialized
    # transpose); f32 accumulation on the MXU.  1/sqrt(H) already folded in Wq.
    s = lax.dot_general(
        q_tile, k_all,
        dimension_numbers=(((2,), (2,)), ((0,), (0,))),
        preferred_element_type=jnp.float32)              # (Bblk, tq, S) f32

    if apply_mask:
        keep = mask_ref[...] != 0                        # tiny (Bblk, 1, S) compare
        s = jnp.where(keep, s, jnp.float32(-1e9))        # exact masked_fill semantics

    o_ref[...] = s.astype(o_ref.dtype)


# --------------------------------------------------------------------------- #
# Generation-aware sizing                                                     #
# --------------------------------------------------------------------------- #
def _tpu_generation():
    """(vmem_capacity_bytes, has_two_tensorcores) with safe fallbacks."""
    vmem_cap = None
    try:
        info = pltpu.get_tpu_info()
        vmem_cap = int(getattr(info, "vmem_capacity_bytes", 0)) or None
    except Exception:
        vmem_cap = None
    two_cores = False
    try:
        kind = jax.devices()[0].device_kind.lower()
        two_cores = ("v7" in kind) or ("tpu7" in kind)
        if vmem_cap is None:
            vmem_cap = (64 << 20) if two_cores else (128 << 20)
    except Exception:
        pass
    if vmem_cap is None:
        vmem_cap = 64 << 20                 # conservative default
    return vmem_cap, two_cores


def _choose_blocks(B, S_pad, *, vmem_cap, two_cores, out_itemsize=4):
    """Pick (batch block, query tile)."""
    # Batch blocking: amortize the ~0.35us/grid-step overhead and fill MXU rows
    # (target ~512 projection rows / step), but on 2-TC chips keep >= 2 batch
    # steps so the "parallel" axis actually shards across TensorCores.
    cap = max(1, 512 // max(S_pad, 1))
    if two_cores and B > 1:
        cap = min(cap, max(1, B // 2))
    bblk = 1
    for d in range(1, B + 1):
        if B % d == 0 and d <= cap:
            bblk = d

    # Query tiling: keep the double-buffered output tile inside a generation-
    # aware budget; prefer tq aligned to the 256-wide MXU, then 128, then 8.
    out_budget = vmem_cap // 4

    def fits(t):
        return 2 * bblk * t * S_pad * out_itemsize <= out_budget

    tq = S_pad
    if not fits(tq):
        tq = None
        for step in (256, 128, 8):
            cand = (S_pad // step) * step
            while cand >= step:
                if S_pad % cand == 0 and fits(cand):
                    tq = cand
                    break
                cand -= step
            if tq is not None:
                break
        if tq is None:
            tq = 8      # smallest legal tile; vmem_limit below stretches to cap
    return bblk, tq


def _vmem_limit_bytes(bblk, S_pad, H, tq, *, apply_mask, vmem_cap, out_itemsize=4):
    est = (
        2 * bblk * S_pad * H * 2                  # x block (bf16), double-buffered
        + 2 * bblk * tq * S_pad * out_itemsize    # output tile, double-buffered
        + 2 * bblk * S_pad * H * 2                # q + k bf16 scratch
        + H * 2 * H * 2 + 2 * H * 4               # single-buffered weights + bias
        + bblk * S_pad * 2 * H * 4                # projection intermediate (f32)
        + bblk * tq * S_pad * 4                   # score intermediate before store
    )
    if apply_mask:
        est += 2 * bblk * S_pad * 2
    est = int(1.3 * est) + (4 << 20)              # regalloc / relayout headroom
    cap = int(vmem_cap * 0.72)                    # ~46 MiB on v7x, ~92 MiB on v5e/v6e
    return max(min(est, cap), min(32 << 20, cap))


# --------------------------------------------------------------------------- #
# Wrapper                                                                     #
# --------------------------------------------------------------------------- #
def pointer_network(inputs, params, masks=None, need_mask=False,
                    out_dtype=jnp.float32):
    """inputs: (B, S, H) float; masks: optional (B, S) with nonzero = keep."""
    B, S, H = inputs.shape
    wq_t, bq, wk_t, bk = params
    scale = 1.0 / math.sqrt(H)

    # Fold 1/sqrt(H) into the Q projection (loop-invariant).  Pack Wq|Wk into
    # one matrix only when H is lane-aligned (otherwise the y[:, :H] split
    # would force relayouts); else keep them stacked for two matmuls.
    packed = (H % 128 == 0)
    if packed:
        wqk = jnp.concatenate([wq_t * scale, wk_t], axis=1).astype(jnp.bfloat16)
        bqk = jnp.concatenate([bq * scale, bk], axis=1).astype(jnp.float32)
    else:
        wqk = jnp.stack([wq_t * scale, wk_t], axis=0).astype(jnp.bfloat16)
        bqk = jnp.stack([bq * scale, bk], axis=0).astype(jnp.float32)

    apply_mask = masks is not None
    mask_keep = (masks != 0).reshape(B, 1, S) if apply_mask else None

    # Pad the sequence axis to a sublane multiple so query tiling is always
    # legal; padded rows / cols are sliced away below.
    S_pad = -(-S // 8) * 8
    x = inputs.astype(jnp.bfloat16)           # bf16: halves x DMA + VMEM block
    if S_pad != S:
        x = jnp.pad(x, ((0, 0), (0, S_pad - S), (0, 0)))

    out_itemsize = jnp.dtype(out_dtype).itemsize
    vmem_cap, two_cores = _tpu_generation()
    bblk, tq = _choose_blocks(B, S_pad, vmem_cap=vmem_cap, two_cores=two_cores,
                              out_itemsize=out_itemsize)
    grid = (B // bblk, S_pad // tq)

    args = [x, wqk, bqk]
    in_specs = [
        pl.BlockSpec((bblk, S_pad, H), lambda b, qi: (b, 0, 0)),   # inputs
        pl.BlockSpec(memory_space=pl.ANY),                         # weights (HBM)
        pl.BlockSpec(memory_space=pl.ANY),                         # biases  (HBM)
    ]
    if apply_mask:
        m = mask_keep.astype(jnp.bfloat16)
        if S_pad != S:
            m = jnp.pad(m, ((0, 0), (0, 0), (0, S_pad - S)))       # pad = masked
        args.append(m)
        in_specs.append(pl.BlockSpec((bblk, 1, S_pad), lambda b, qi: (b, 0, 0)))

    out_specs = pl.BlockSpec((bblk, tq, S_pad), lambda b, qi: (b, qi, 0))

    flops = 2 * B * S_pad * H * (2 * H) + 2 * B * S_pad * S_pad * H
    bytes_accessed = (int(x.size) * 2 + int(wqk.size) * 2 + int(bqk.size) * 4
                      + B * S_pad * S_pad * out_itemsize
                      + (B * S_pad * 2 if apply_mask else 0))
    cost = pl.CostEstimate(flops=int(flops), transcendentals=0,
                           bytes_accessed=int(bytes_accessed))

    kernel = partial(_pointer_kernel, H=H, tq=tq,
                     apply_mask=apply_mask, packed=packed)

    scores = pl.pallas_call(
        kernel,
        out_shape=jax.ShapeDtypeStruct((B, S_pad, S_pad), out_dtype),
        grid_spec=pltpu.PrefetchScalarGridSpec(
            num_scalar_prefetch=0,
            grid=grid,
            in_specs=in_specs,
            out_specs=out_specs,
            scratch_shapes=[
                pltpu.VMEM(tuple(wqk.shape), jnp.bfloat16),    # resident weights
                pltpu.VMEM(tuple(bqk.shape), jnp.float32),     # resident biases
                pltpu.VMEM((bblk, S_pad, H), jnp.bfloat16),    # q scratch (bf16)
                pltpu.VMEM((bblk, S_pad, H), jnp.bfloat16),    # k scratch (bf16)
                pltpu.SemaphoreType.DMA((2,)),                 # weight/bias DMA sems
            ],
        ),
        compiler_params=pltpu.CompilerParams(
            # The query-tile axis reuses scratch computed at qi == 0 -> arbitrary.
            dimension_semantics=("parallel", "arbitrary"),
            vmem_limit_bytes=_vmem_limit_bytes(
                bblk, S_pad, H, tq, apply_mask=apply_mask,
                vmem_cap=vmem_cap, out_itemsize=out_itemsize),
        ),
        cost_estimate=cost,
    )(*args)

    if S_pad != S:
        scores = scores[:, :S, :S]

    if need_mask:
        mk = mask_keep if mask_keep is not None else jnp.ones((B, 1, S), bool)
        return scores, mk.astype(jnp.float32)
    return scores


# --------------------------------------------------------------------------- #
# Params / reference                                                          #
# --------------------------------------------------------------------------- #
def init_params(key, hidden):
    """Deterministic Linear(hidden, hidden) x2 params (stored pre-transposed)."""
    k1, k2, k3, k4 = jax.random.split(key, 4)
    bound = 1.0 / math.sqrt(hidden)
    # nn.Linear weight is (out, in); store W^T = (in, out) so y = x @ W^T + b.
    wq_t = jax.random.uniform(k1, (hidden, hidden), jnp.float32, -bound, bound)
    bq = jax.random.uniform(k2, (1, hidden), jnp.float32, -bound, bound)
    wk_t = jax.random.uniform(k3, (hidden, hidden), jnp.float32, -bound, bound)
    bk = jax.random.uniform(k4, (1, hidden), jnp.float32, -bound, bound)
    return wq_t, bq, wk_t, bk


def _reference(inputs, params, masks=None, mirror_bf16=False):
    """Pure-JAX reference.  mirror_bf16=True quantizes the matmul operands to
    bf16 at the same points the kernel does (f32 accumulation) for a tight
    numerical check; mirror_bf16=False is the exact f32 module semantics."""
    wq_t, bq, wk_t, bk = params
    H = inputs.shape[-1]
    scale = 1.0 / math.sqrt(H)
    hi = lax.Precision.HIGHEST

    if mirror_bf16:
        qz = lambda a: a.astype(jnp.bfloat16).astype(jnp.float32)
        x = qz(inputs)
        q = jnp.einsum("bsh,hd->bsd", x, qz(wq_t * scale), precision=hi) + bq * scale
        k = jnp.einsum("bsh,hd->bsd", x, qz(wk_t), precision=hi) + bk
        s = jnp.einsum("bqd,bkd->bqk", qz(q), qz(k), precision=hi)
    else:
        q = jnp.einsum("bsh,hd->bsd", inputs, wq_t, precision=hi) + bq
        k = jnp.einsum("bsh,hd->bsd", inputs, wk_t, precision=hi) + bk
        s = jnp.einsum("bqd,bkd->bqk", q, k, precision=hi) * scale

    if masks is not None:
        s = jnp.where(masks[:, None, :] == 0, jnp.float32(-1e9), s)
    return s


# --------------------------------------------------------------------------- #
# Self-test                                                                   #
# --------------------------------------------------------------------------- #
if __name__ == "__main__":
    key = jax.random.PRNGKey(0)
    k_in, k_param, k_in2, k_param2 = jax.random.split(key, 4)

    # --- Case 1: B=2, S=8, H=32 (masked + unmasked paths) ---
    B, S, H = 2, 8, 32
    inputs = jax.random.normal(k_in, (B, S, H), jnp.float32)
    params = init_params(k_param, H)
    masks = jnp.concatenate(
        [jnp.ones((B, S - 2), jnp.int32), jnp.zeros((B, 2), jnp.int32)], axis=1)

    scores, out_mask = pointer_network(inputs, params, masks=masks, need_mask=True)
    scores = jax.block_until_ready(scores)
    assert scores.shape == (B, S, S)

    ref_tight = _reference(inputs, params, masks=masks, mirror_bf16=True)
    assert jnp.allclose(scores, ref_tight, atol=1e-2, rtol=1e-2), \
        "mismatch vs bf16-mirrored reference"
    ref_exact = _reference(inputs, params, masks=masks, mirror_bf16=False)
    assert jnp.allclose(scores, ref_exact, atol=1e-1, rtol=1e-1), \
        "mismatch vs f32 reference"

    scores_nm = jax.block_until_ready(pointer_network(inputs, params))
    ref_nm = _reference(inputs, params, mirror_bf16=True)
    assert jnp.allclose(scores_nm, ref_nm, atol=1e-2, rtol=1e-2), \
        "mismatch (no-mask path)"

    # --- Case 2: ragged S (exercises the sequence-padding path) ---
    B2, S2, H2 = 3, 12, 32
    inputs2 = jax.random.normal(k_in2, (B2, S2, H2), jnp.float32)
    params2 = init_params(k_param2, H2)
    masks2 = jnp.concatenate(
        [jnp.ones((B2, S2 - 3), jnp.int32), jnp.zeros((B2, 3), jnp.int32)], axis=1)
    scores2 = jax.block_until_ready(
        pointer_network(inputs2, params2, masks=masks2))
    assert scores2.shape == (B2, S2, S2)
    ref2 = _reference(inputs2, params2, masks=masks2, mirror_bf16=True)
    assert jnp.allclose(scores2, ref2, atol=1e-2, rtol=1e-2), \
        "mismatch (padded-sequence path)"

    print("KERNEL_OK")
</pallas_src>

<mosaic_0001>
module attributes {stable_mosaic.version = 11 : i64} {
  func.func @_pointer_kernel(%arg0: i32, %arg1: i32, %arg2: memref<2x8x32xbf16, #tpu.memory_space<vmem>>, %arg3: memref<2x32x32xbf16, #tpu.memory_space<any>>, %arg4: memref<2x1x32xf32, #tpu.memory_space<any>>, %arg5: memref<2x1x8xbf16, #tpu.memory_space<vmem>>, %arg6: memref<2x8x8xf32, #tpu.memory_space<vmem>>, %arg7: memref<2x32x32xbf16, #tpu.memory_space<vmem>>, %arg8: memref<2x1x32xf32, #tpu.memory_space<vmem>>, %arg9: memref<2x8x32xbf16, #tpu.memory_space<vmem>>, %arg10: memref<2x8x32xbf16, #tpu.memory_space<vmem>>, %arg11: memref<2x!tpu.dma_semaphore, #tpu.memory_space<semaphore_mem>>) attributes {dimension_semantics = [#tpu.dimension_semantics<parallel>, #tpu.dimension_semantics<arbitrary>], iteration_bounds = array<i64: 1, 1>, scalar_prefetch = 0 : i64, scratch_operands = 5 : i64, tpu.core_type = #tpu.core_type<tc>, window_params = [{transform_indices = @transform_0, window_bounds = array<i64: 2, 8, 32>}, {}, {}, {transform_indices = @transform_3, window_bounds = array<i64: 2, 1, 8>}, {transform_indices = @transform_4, window_bounds = array<i64: 2, 8, 8>}]} {
    %c0_i32 = arith.constant 0 : i32
    %0 = arith.cmpi eq, %arg1, %c0_i32 : i32
    %1 = arith.extui %0 : i1 to i32
    %c0_i32_0 = arith.constant 0 : i32
    %2 = arith.cmpi ne, %1, %c0_i32_0 : i32
    scf.if %2 {
      %c0_i32_13 = arith.constant 0 : i32
      %17 = tpu.memref_slice %arg11[%c0_i32_13] : memref<2x!tpu.dma_semaphore, #tpu.memory_space<semaphore_mem>> -> memref<1x!tpu.dma_semaphore, #tpu.memory_space<semaphore_mem>>
      %18 = tpu.memref_squeeze %17 : memref<1x!tpu.dma_semaphore, #tpu.memory_space<semaphore_mem>> -> memref<!tpu.dma_semaphore, #tpu.memory_space<semaphore_mem>>
      tpu.enqueue_dma source(%arg3 : memref<2x32x32xbf16, #tpu.memory_space<any>>) target(%arg7 : memref<2x32x32xbf16, #tpu.memory_space<vmem>>) target_semaphore(%18 : memref<!tpu.dma_semaphore, #tpu.memory_space<semaphore_mem>>)
      %c1_i32 = arith.constant 1 : i32
      %19 = tpu.memref_slice %arg11[%c1_i32] : memref<2x!tpu.dma_semaphore, #tpu.memory_space<semaphore_mem>> -> memref<1x!tpu.dma_semaphore, #tpu.memory_space<semaphore_mem>>
      %20 = tpu.memref_squeeze %19 : memref<1x!tpu.dma_semaphore, #tpu.memory_space<semaphore_mem>> -> memref<!tpu.dma_semaphore, #tpu.memory_space<semaphore_mem>>
      tpu.enqueue_dma source(%arg4 : memref<2x1x32xf32, #tpu.memory_space<any>>) target(%arg8 : memref<2x1x32xf32, #tpu.memory_space<vmem>>) target_semaphore(%20 : memref<!tpu.dma_semaphore, #tpu.memory_space<semaphore_mem>>)
      %c0_i32_14 = arith.constant 0 : i32
      %21 = tpu.memref_slice %arg11[%c0_i32_14] : memref<2x!tpu.dma_semaphore, #tpu.memory_space<semaphore_mem>> -> memref<1x!tpu.dma_semaphore, #tpu.memory_space<semaphore_mem>>
      %22 = tpu.memref_squeeze %21 : memref<1x!tpu.dma_semaphore, #tpu.memory_space<semaphore_mem>> -> memref<!tpu.dma_semaphore, #tpu.memory_space<semaphore_mem>>
      tpu.wait_dma2 semaphore(%22 : memref<!tpu.dma_semaphore, #tpu.memory_space<semaphore_mem>>) src(%arg3 : memref<2x32x32xbf16, #tpu.memory_space<any>>) dst(%arg7 : memref<2x32x32xbf16, #tpu.memory_space<vmem>>)
      %c1_i32_15 = arith.constant 1 : i32
      %23 = tpu.memref_slice %arg11[%c1_i32_15] : memref<2x!tpu.dma_semaphore, #tpu.memory_space<semaphore_mem>> -> memref<1x!tpu.dma_semaphore, #tpu.memory_space<semaphore_mem>>
      %24 = tpu.memref_squeeze %23 : memref<1x!tpu.dma_semaphore, #tpu.memory_space<semaphore_mem>> -> memref<!tpu.dma_semaphore, #tpu.memory_space<semaphore_mem>>
      tpu.wait_dma2 semaphore(%24 : memref<!tpu.dma_semaphore, #tpu.memory_space<semaphore_mem>>) src(%arg4 : memref<2x1x32xf32, #tpu.memory_space<any>>) dst(%arg8 : memref<2x1x32xf32, #tpu.memory_space<vmem>>)
      %c0_16 = arith.constant 0 : index
      %c0_17 = arith.constant 0 : index
      %c0_18 = arith.constant 0 : index
      %25 = vector.load %arg2[%c0_16, %c0_17, %c0_18] : memref<2x8x32xbf16, #tpu.memory_space<vmem>>, vector<2x8x32xbf16>
      %26 = vector.shape_cast %25 : vector<2x8x32xbf16> to vector<16x32xbf16>
      %c0_19 = arith.constant 0 : index
      %c0_20 = arith.constant 0 : index
      %c0_21 = arith.constant 0 : index
      %27 = vector.load %arg7[%c0_19, %c0_20, %c0_21] : memref<2x32x32xbf16, #tpu.memory_space<vmem>>, vector<1x32x32xbf16>
      %28 = vector.shape_cast %27 : vector<1x32x32xbf16> to vector<32x32xbf16>
      %cst_22 = arith.constant dense<0.000000e+00> : vector<16x32xf32>
      %29 = tpu.matmul %26, %28, %cst_22 {dimension_numbers = #tpu.dot_dimension_numbers<[1], [0], [0], [1], [0, 0, 1, 1], [], []>} : vector<16x32xbf16>, vector<32x32xbf16>, vector<16x32xf32> -> vector<16x32xf32>
      %c0_23 = arith.constant 0 : index
      %c0_24 = arith.constant 0 : index
      %c0_25 = arith.constant 0 : index
      %30 = vector.load %arg8[%c0_23, %c0_24, %c0_25] : memref<2x1x32xf32, #tpu.memory_space<vmem>>, vector<1x1x32xf32>
      %31 = vector.shape_cast %30 : vector<1x1x32xf32> to vector<1x32xf32>
      %32 = vector.broadcast %31 : vector<1x32xf32> to vector<16x32xf32>
      %33 = arith.addf %29, %32 : vector<16x32xf32>
      %c1 = arith.constant 1 : index
      %c0_26 = arith.constant 0 : index
      %c0_27 = arith.constant 0 : index
      %34 = vector.load %arg7[%c1, %c0_26, %c0_27] : memref<2x32x32xbf16, #tpu.memory_space<vmem>>, vector<1x32x32xbf16>
      %35 = vector.shape_cast %34 : vector<1x32x32xbf16> to vector<32x32xbf16>
      %cst_28 = arith.constant dense<0.000000e+00> : vector<16x32xf32>
      %36 = tpu.matmul %26, %35, %cst_28 {dimension_numbers = #tpu.dot_dimension_numbers<[1], [0], [0], [1], [0, 0, 1, 1], [], []>} : vector<16x32xbf16>, vector<32x32xbf16>, vector<16x32xf32> -> vector<16x32xf32>
      %c1_29 = arith.constant 1 : index
      %c0_30 = arith.constant 0 : index
      %c0_31 = arith.constant 0 : index
      %37 = vector.load %arg8[%c1_29, %c0_30, %c0_31] : memref<2x1x32xf32, #tpu.memory_space<vmem>>, vector<1x1x32xf32>
      %38 = vector.shape_cast %37 : vector<1x1x32xf32> to vector<1x32xf32>
      %39 = vector.broadcast %38 : vector<1x32xf32> to vector<16x32xf32>
      %40 = arith.addf %36, %39 : vector<16x32xf32>
      %41 = vector.shape_cast %33 : vector<16x32xf32> to vector<2x8x32xf32>
      %42 = arith.truncf %41 : vector<2x8x32xf32> to vector<2x8x32xbf16>
      %c0_32 = arith.constant 0 : index
      %c0_33 = arith.constant 0 : index
      %c0_34 = arith.constant 0 : index
      %43 = vector.load %arg9[%c0_32, %c0_33, %c0_34] : memref<2x8x32xbf16, #tpu.memory_space<vmem>>, vector<2x8x32xbf16>
      tpu.vector_store %arg9[%c0_32, %c0_33, %c0_34], %42 {strides = array<i32>} : memref<2x8x32xbf16, #tpu.memory_space<vmem>>, vector<2x8x32xbf16>,
      %44 = vector.shape_cast %40 : vector<16x32xf32> to vector<2x8x32xf32>
      %45 = arith.truncf %44 : vector<2x8x32xf32> to vector<2x8x32xbf16>
      %c0_35 = arith.constant 0 : index
      %c0_36 = arith.constant 0 : index
      %c0_37 = arith.constant 0 : index
      %46 = vector.load %arg10[%c0_35, %c0_36, %c0_37] : memref<2x8x32xbf16, #tpu.memory_space<vmem>>, vector<2x8x32xbf16>
      tpu.vector_store %arg10[%c0_35, %c0_36, %c0_37], %45 {strides = array<i32>} : memref<2x8x32xbf16, #tpu.memory_space<vmem>>, vector<2x8x32xbf16>,
    } else {
    }
    %c8_i32 = arith.constant 8 : i32
    %3 = arith.muli %arg1, %c8_i32 : i32
    %4 = tpu.assume_multiple %3, 8 : i32
    %c0 = arith.constant 0 : index
    %5 = arith.index_cast %4 : i32 to index
    %c0_1 = arith.constant 0 : index
    %6 = vector.load %arg9[%c0, %5, %c0_1] : memref<2x8x32xbf16, #tpu.memory_space<vmem>>, vector<2x8x32xbf16>
    %c0_2 = arith.constant 0 : index
    %c0_3 = arith.constant 0 : index
    %c0_4 = arith.constant 0 : index
    %7 = vector.load %arg10[%c0_2, %c0_3, %c0_4] : memref<2x8x32xbf16, #tpu.memory_space<vmem>>, vector<2x8x32xbf16>
    %cst = arith.constant dense<0.000000e+00> : vector<2x8x8xf32>
    %8 = tpu.matmul %6, %7, %cst {dimension_numbers = #tpu.dot_dimension_numbers<[2], [2], [1], [1], [0, 0, 0, 1, 1, 1], [0], [0]>} : vector<2x8x32xbf16>, vector<2x8x32xbf16>, vector<2x8x8xf32> -> vector<2x8x8xf32>
    %c0_5 = arith.constant 0 : index
    %c0_6 = arith.constant 0 : index
    %c0_7 = arith.constant 0 : index
    %9 = vector.load %arg5[%c0_5, %c0_6, %c0_7] : memref<2x1x8xbf16, #tpu.memory_space<vmem>>, vector<2x1x8xbf16>
    %cst_8 = arith.constant 0.000000e+00 : bf16
    %10 = vector.broadcast %cst_8 : bf16 to vector<2x1x8xbf16>
    %11 = arith.cmpf one, %9, %10 : vector<2x1x8xbf16>
    %cst_9 = arith.constant -1.000000e+09 : f32
    %12 = vector.shape_cast %11 : vector<2x1x8xi1> to vector<2x1x8xi1>
    %13 = vector.broadcast %12 : vector<2x1x8xi1> to vector<2x8x8xi1>
    %14 = vector.broadcast %cst_9 : f32 to vector<2x8x8xf32>
    %15 = arith.select %13, %8, %14 : vector<2x8x8xi1>, vector<2x8x8xf32>
    %c0_10 = arith.constant 0 : index
    %c0_11 = arith.constant 0 : index
    %c0_12 = arith.constant 0 : index
    %16 = vector.load %arg6[%c0_10, %c0_11, %c0_12] : memref<2x8x8xf32, #tpu.memory_space<vmem>>, vector<2x8x8xf32>
    tpu.vector_store %arg6[%c0_10, %c0_11, %c0_12], %15 {strides = array<i32>} : memref<2x8x8xf32, #tpu.memory_space<vmem>>, vector<2x8x8xf32>,
    return
  }
  func.func @transform_0(%arg0: i32, %arg1: i32) -> (i32, i32, i32) {
    %c0_i32 = arith.constant 0 : i32
    %c0_i32_0 = arith.constant 0 : i32
    %c0_i32_1 = arith.constant 0 : i32
    return %arg0, %c0_i32, %c0_i32_0 : i32, i32, i32
  }
  func.func @transform_3(%arg0: i32, %arg1: i32) -> (i32, i32, i32) {
    %c0_i32 = arith.constant 0 : i32
    %c0_i32_0 = arith.constant 0 : i32
    %c0_i32_1 = arith.constant 0 : i32
    return %arg0, %c0_i32, %c0_i32_0 : i32, i32, i32
  }
  func.func @transform_4(%arg0: i32, %arg1: i32) -> (i32, i32, i32) {
    %c0_i32 = arith.constant 0 : i32
    %c0_i32_0 = arith.constant 0 : i32
    return %arg0, %arg1, %c0_i32 : i32, i32, i32
  }
}

</mosaic_0001>

<bundles_post_ra>
// kernel: tpu_custom_call.1
= control target key start
LH: loop header
LB: loop body
LE: loop exit
PB: predicated region body
PF: predicated region fallthrough
CT: control target
= control target key end

     0   :  { %9 = vsyncpa [#allocation8], 0  ;;  %s624_s0 = inlined_call_operand.hbm [shape: bf16[2,8,32], index: 0, kind: input, shape index: {}]   ;;  %s625_s1 = inlined_call_operand.hbm [shape: bf16[2,32,32], index: 1, kind: input, shape index: {}]   ;;  %s626_s2 = inlined_call_operand.vmem [shape: f32[2,1,32], index: 2, kind: input, shape index: {}]   ;;  %s627_s3 = inlined_call_operand.vmem [shape: bf16[2,1,8], index: 3, kind: input, shape index: {}]   ;;  %s628_s4 = inlined_call_operand.hbm [shape: f32[2,8,8], index: 4, kind: output, shape index: {}]  }
   0x1   :  { %10 = vsyncpa [#allocation9], 0  ;;  %s557_s15 = smov [#allocation7]  }
   0x2   :  { %s16_s16 = sshll.u32 %s557_s15, 4  ;;  %s17_s16 = int_to_ptr.vmem [resolvable:$true] %s16_s16 }
   0x3   :  { %s497_s17 = scalar_lea.vmem %s17_s16, 128  ;;  %p502_p1 = scmp.lt.s32.totalorder %s17_s16, %s17_s16 }
   0x4   :  { %p498_p0 = scmp.ne.s32.totalorder %s17_s16, %s497_s17  ;;  %p503_p2 = scmp.lt.s32.totalorder %s497_s17, %s497_s17 }
   0x6   :  { %p504_p3 = por %p503_p2, %p502_p1 }
   0x8   :  { %p505_p4 = pnand %p504_p3, %p498_p0 }
   0xa   :  { %508 = shalt.err (!%p505_p4)
}
   0xb   :  { %s558_s18 = smov 64   ;;  %s559_s19 = smov 4  }
   0xc   :  { %22 = dma.hbm_to_vmem [thread:$0]  %s624_s0, 128, %s17_s16, [#allocation8], %s558_s18, %s558_s18, %s559_s19  }
   0xd   :  { %549 = dma.done.wait [#allocation8], 128  }
   0xe   :  { %550 = vsyncadd [#allocation8], 4294967168  ;;  %s560_s22 = smov [#allocation2]  }
   0xf   :  { %s42_s23 = sshll.u32 %s560_s22, 4  ;;  %s43_s23 = int_to_ptr.vmem [resolvable:$true] %s42_s23 }
  0x10   :  { %s517_s24 = scalar_lea.vmem %s43_s23, 512  ;;  %p522_p6 = scmp.lt.s32.totalorder %s43_s23, %s43_s23 }
  0x11   :  { %p518_p5 = scmp.ne.s32.totalorder %s43_s23, %s517_s24  ;;  %p523_p7 = scmp.lt.s32.totalorder %s517_s24, %s517_s24 }
  0x13   :  { %p524_p8 = por %p523_p7, %p522_p6 }
  0x15   :  { %p525_p9 = pnand %p524_p8, %p518_p5 }
  0x17   :  { %528 = shalt.err (!%p525_p9)  }
  0x18   :  { %45 = dma.hbm_to_vmem [thread:$0]  %s625_s1, 512, %s43_s23, [#allocation6]  ;;  %v65_v0 = vld [vmem:[%s626_s2] sm:$0x3] }
  0x19   :  { %66 = vst [vmem:[#allocation3] sm:$0x3] %v65_v0 }
  0x1a   :  { %92 = vsyncadd [#allocation6 + $0x1], 32 }
  0x1b   :  { %551 = dma.done.wait [#allocation6], 512 }
  0x1c   :  { %552 = vsyncadd [#allocation6], 4294966784 }
  0x1d   :  { %553 = dma.done.wait [#allocation6 + $0x1], 32 }
  0x1e   :  { %554 = vsyncadd [#allocation6 + $0x1], 4294967264  ;;  %v561_v1 = vmov 0.0   ;;  %vm562_vm0 = vmmov 0   ;;  %v484_v2 = vld [vmem:[#allocation2 + $0x18] sm:$0xff]   ;;  %v485_v3 = vld [vmem:[#allocation2 + $0x8] sm:$0xff]   ;;  %v366_v35 = vlaneseq }
  0x1f   :  { %454 = vmatprep.subr.bf16.mxu1 %v561_v1  ;;  %446 = vmatprep.subr.bf16.mxu0 %v561_v1  ;;  %v486_v4 = vld [vmem:[#allocation2 + $0x10] sm:$0xff]   ;;  %v487_v5 = vld [vmem:[#allocation2] sm:$0xff]   ;;  %vm132_vm1 = vcmask 261120   ;;  %vm245_vm2 = vcmask 257024   ;;  %v563_v33 = vmov 0   ;;  %vm378_vm8 = vcmask 64512  }
  0x20   :  { %458 = vmatprep.mubr.msk.bf16.mxu1 %vm562_vm0, %v561_v1  ;;  %450 = vmatprep.mubr.msk.bf16.mxu0 %vm562_vm0, %v561_v1  ;;  %v488_v6 = vld [vmem:[#allocation7] sm:$0xff]   ;;  %v428_v7 = vld [vmem:[#allocation3 + $0x1] ss:$0 sm:$0xff]  ;;  %v423_v8 = vld [vmem:[#allocation3] ss:$0 sm:$0xff]  ;;  %v367_v38 = vshrl.u32 %v366_v35, 7 }
  0x21   :  { %455 = vmatpush3.bf16.msra.mxu1 %v484_v2  ;;  %447 = vmatpush3.bf16.msra.mxu0 %v485_v3  ;;  %v354_v31 = vld [vmem:[%s627_s3] sm:$0x1]  ;;  %v355_v32 = vld [vmem:[%s627_s3 + $0x1] sm:$0x1]  ;;  %s564_s30 = smov [#allocation10]  }
  0x22   :  { %456 = vmatprep.subr.bf16.mxu1 %v561_v1  ;;  %448 = vmatprep.subr.bf16.mxu0 %v561_v1  ;;  %vm356_vm3 = vcmp.ne.bf16.partialorder %v354_v31, 0  ;;  %vm357_vm4 = vcmp.ne.bf16.partialorder %v355_v32, 0  ;;  %v368_v40 = vsub.s32 0, %v367_v38  ;;  %s386_s3 = sshll.u32 %s564_s30, 4  ;;  %s387_s3 = int_to_ptr.vmem [resolvable:$true] %s386_s3 }
  0x23   :  { %v358_v34 = vsel %vm356_vm3, 65537, %v563_v33  ;;  %v359_v37 = vsel %vm357_vm4, 65537, %v563_v33  ;;  %s529_s5 = scalar_lea.vmem %s387_s3, 256  ;;  %p534_p11 = scmp.lt.s32.totalorder %s387_s3, %s387_s3 }
  0x24   :  { %v360_v36 = vunpack.c.l.b16 %v358_v34  ;;  %v361_v39 = vunpack.c.l.b16 %v359_v37  ;;  %p530_p10 = scmp.ne.s32.totalorder %s387_s3, %s529_s5  ;;  %p535_p12 = scmp.lt.s32.totalorder %s529_s5, %s529_s5 }
  0x25   :  { %457 = vmatpush3.bf16.msra.mxu1 %v486_v4  ;;  %449 = vmatpush3.bf16.msra.mxu0 %v487_v5 }
  0x26   :  { %468 = vmatprep.subr.bf16.mxu1 %v561_v1  ;;  %462 = vmatprep.subr.bf16.mxu0 %v561_v1  ;;  %vm362_vm5 = vcmp.ne.s32.totalorder %v360_v36, 0  ;;  %vm363_vm6 = vcmp.ne.s32.totalorder %v361_v39, 0  ;;  %p536_p13 = por %p535_p12, %p534_p11 }
  0x27   :  { %v364_v41 = vsel %vm362_vm5, 1, %v563_v33  ;;  %v365_v43 = vsel %vm363_vm6, 1, %v563_v33 }
  0x28   :  { %459 = vmatmul.mubr.msk.bf16.vlgmr.msra.gmra.mxu1 %vm132_vm1, %v488_v6  ;;  %451 = vmatmul.mubr.msk.bf16.vlgmr.msra.gmra.mxu0 %vm132_vm1, %v488_v6  ;;  %v369_v42 = vrot.slane %v364_v41, %v368_v40  ;;  %v373_v44 = vrot.slane %v365_v43, %v368_v40  ;;  %p537_p0 = pnand %p536_p13, %p530_p10 }
  0x29   :  { %470 = vmatprep.mubr.msk.bf16.mxu1 %vm562_vm0, %v561_v1  ;;  %464 = vmatprep.mubr.msk.bf16.mxu0 %vm562_vm0, %v561_v1 }
  0x2a   :  { %vm374_vm7 = vcmp.eq.s32.totalorder %v369_v42, 1  ;;  %vm375_vm9 = vcmp.eq.s32.totalorder %v373_v44, 1 }
  0xe8   :  { %v236_v9 = vpop.f32.mrf.mxu1  ;;  %v170_v11 = vpop.f32.mrf.mxu0 }
  0xe9   :  { %v237_v10 = vadd.f32 %v428_v7, %v236_v9  ;;  %v171_v13 = vadd.f32 %v423_v8, %v170_v11 }
  0xea   :  { %v460_v12 = vpop.f32.mrf.mxu1  ;;  %v452_v15 = vpop.f32.mrf.mxu0 }
  0xeb   :  { %v248_v14 = vpack.c.bf16 %v237_v10, %v237_v10  ;;  %v243_v16 = vpack.c.bf16 %v171_v13, %v171_v13 }
  0xec   :  { %v239_v17 = vpop.f32.mrf.mxu1  ;;  %v173_v19 = vpop.f32.mrf.mxu0 }
  0xed   :  { %250 = vst.msk [vmem:[#allocation5] sm:$0xf] %vm245_vm2, %v248_v14  ;;  %v240_v18 = vadd.f32 %v428_v7, %v239_v17  ;;  %246 = vst.msk [vmem:[#allocation4] sm:$0xf] %vm245_vm2, %v243_v16  ;;  %v174_v21 = vadd.f32 %v423_v8, %v173_v19 }
  0xee   :  { %v461_v20 = vpop.f32.mrf.mxu1  ;;  %v453_v23 = vpop.f32.mrf.mxu0 }
  0xef   :  { %v249_v22 = vpack.c.bf16 %v240_v18, %v240_v18  ;;  %v244_v24 = vpack.c.bf16 %v174_v21, %v174_v21 }
  0xf1   :  { %251 = vst.msk [vmem:[#allocation5 + $0x4] sm:$0xf] %vm245_vm2, %v249_v22  ;;  %247 = vst.msk [vmem:[#allocation4 + $0x4] sm:$0xf] %vm245_vm2, %v244_v24 }
  0xf4   :  { %v259_v25 = vld [vmem:[#allocation5] sm:$0xf]  ;;  %v257_v29 = vld [vmem:[#allocation4] sm:$0xf] }
  0xf5   :  { %v266_v26 = vsel %vm132_vm1, %v259_v25, 0 }
  0xf6   :  { %463 = vmatpush3.bf16.xpose.msra.mxu0 %v266_v26 }
  0xf8   :  { %v260_v27 = vld [vmem:[#allocation5 + $0x4] sm:$0xf]  ;;  %v258_v30 = vld [vmem:[#allocation4 + $0x4] sm:$0xf] }
  0xf9   :  { %v312_v28 = vsel %vm132_vm1, %v260_v27, 0 }
  0xfa   :  { %469 = vmatpush3.bf16.xpose.msra.mxu1 %v312_v28 }
  0xfd   :  { %465 = vmatmul.mubr.msk.bf16.vlgmr.msra.gmra.mxu0 %vm132_vm1, %v257_v29 }
 0x101   :  { %471 = vmatmul.mubr.msk.bf16.vlgmr.msra.gmra.mxu1 %vm132_vm1, %v258_v30 }
 0x1bd   :  { %v302_v45 = vpop.f32.mrf.mxu0 }
 0x1be   :  { %v376_v46 = vsel %vm374_vm7, %v302_v45, -1e+09 }
 0x1bf   :  { %379 = vst.msk [vmem:[#allocation10] sm:$0xff] %vm378_vm8, %v376_v46  ;;  %v466_v47 = vpop.f32.mrf.mxu0 }
 0x1c1   :  { %v305_v48 = vpop.f32.mrf.mxu0  ;;  %v348_v49 = vpop.f32.mrf.mxu1 }
 0x1c2   :  { %v377_v50 = vsel %vm375_vm9, %v348_v49, -1e+09 }
 0x1c3   :  { %380 = vst.msk [vmem:[#allocation10 + $0x8] sm:$0xff] %vm378_vm8, %v377_v50  ;;  %v467_v51 = vpop.f32.mrf.mxu0  ;;  %v472_v52 = vpop.f32.mrf.mxu1 }
 0x1c4   :  { %540 = shalt.err (!%p537_p0)
}
 0x1c5   :  { %s565_s6 = smov 128   ;;  %s566_s7 = smov 8   ;;  %v351_v53 = vpop.f32.mrf.mxu1 }
 0x1c6   :  { %392 = dma.vmem_to_hbm [thread:$0]  %s387_s3, 256, %s628_s4, [#allocation9], %s565_s6, %s565_s6, %s566_s7  }
 0x1c7   :  { %v473_v54 = vpop.f32.mrf.mxu1 }
 0x1c8   :  { %555 = dma.done.wait [#allocation9], 256  }
 0x1c9   :  { %556 = vsyncadd [#allocation9], 4294967040 }
 0x1ca   :  { %396 = vsyncpa [#allocation8], 1 }
 0x1cb   :  { %397 = vsyncpa [#allocation9], 1 }
 0x1cc   :  { %398 = vsyncmov [#allocation6] }
 0x1cf   :  { %s399_s10 = vpop.sfrf %398 }
 0x1d0   :  { %p434_p1 = scmp.ne.s32.totalorder %s399_s10, 0 }
 0x1d2   :  { %403 = shalt.err (%p434_p1)  }
 0x1d3   :  { %405 = vsyncmov [#allocation6 + $0x1] }
 0x1d6   :  { %s406_s11 = vpop.sfrf %405 }
 0x1d7   :  { %p435_p2 = scmp.ne.s32.totalorder %s406_s11, 0 }
 0x1d9   :  { %410 = shalt.err (%p435_p2)  }

</bundles_post_ra>
